<compile_context>
chip_gen: v6e
topology: v6e:2x2x1
jax: 0.10.0
libtpu: 0.0.40
codegen_flags: <defaults>
</compile_context>

<pallas_src>
import jax
import jax.numpy as jnp
from jax.experimental import pallas as pl
from jax.experimental.pallas import tpu as pltpu


def _round_up(v, m):
    return ((v + m - 1) // m) * m


def attn_net_kernel(x_ref, w1_ref, b1_ref, w2_ref, b2_ref, at_ref):
    # x_ref : (TN, L) bf16      w1_ref: (L, D) bf16
    # b1_ref: (1, D)  f32       w2_ref: (1, D) f32 (Linear(D,1) weight row)
    # b2_ref: (1, 1)  f32 in SMEM
    # at_ref: (1, TN) f32  -- attention scores, transposed (lane-dense store)
    h = jnp.dot(x_ref[...], w1_ref[...],
                preferred_element_type=jnp.float32)          # (TN, D) f32 acc
    h = jnp.tanh(h + b1_ref[...])                            # bias broadcast
    # TODO(synk): training-mode Dropout(p=0.25) omitted (eval-mode identity).
    # Second Linear with n_classes == 1: VPU multiply + lane reduce (XLU),
    # keeping the MXU free and the accumulation in f32.
    p = h * w2_ref[...]                                      # (TN, D)
    a = jnp.sum(p, axis=-1) + b2_ref[0, 0]                   # (TN,)
    at_ref[...] = a[None, :].astype(at_ref.dtype)            # (1, TN)


def attn_net_forward(x, w1, b1, w2, b2, *, block_n=512):
    """Returns (A, x) exactly like Attn_Net.forward (eval mode).

    x : (N, L)          w1: (L, D)   b1: (1, D) or (D,)
    w2: (D, 1)          b2: (1, 1) or (1,)
    A : (N, 1)
    """
    N, L = x.shape
    D = w1.shape[1]
    C = w2.shape[1]
    assert C == 1, "kernel specializes n_classes == 1 (module default)"
    assert block_n % 128 == 0

    # Row tile: lane-aligned (multiple of 128); pad N up to a tile multiple.
    tn = min(block_n, _round_up(max(N, 1), 128))
    n_pad = _round_up(N, tn)

    x_b = x.astype(jnp.bfloat16)
    if n_pad != N:
        x_b = jnp.pad(x_b, ((0, n_pad - N), (0, 0)))
    w1_b = w1.astype(jnp.bfloat16)
    b1_f = jnp.asarray(b1, jnp.float32).reshape(1, D)
    w2_row = jnp.asarray(w2, jnp.float32).reshape(D, 1).T    # (1, D)
    b2_s = jnp.asarray(b2, jnp.float32).reshape(1, 1)

    a_t = pl.pallas_call(
        attn_net_kernel,
        out_shape=jax.ShapeDtypeStruct((1, n_pad), jnp.float32),
        grid_spec=pltpu.PrefetchScalarGridSpec(
            num_scalar_prefetch=0,
            grid=(n_pad // tn,),
            in_specs=[
                pl.BlockSpec((tn, L), lambda i: (i, 0)),     # x: tiled over N
                pl.BlockSpec((L, D), lambda i: (0, 0)),      # w1: resident
                pl.BlockSpec((1, D), lambda i: (0, 0)),      # b1: resident
                pl.BlockSpec((1, D), lambda i: (0, 0)),      # w2 row: resident
                pl.BlockSpec(memory_space=pltpu.MemorySpace.SMEM),  # b2 scalar
            ],
            out_specs=pl.BlockSpec((1, tn), lambda i: (0, i)),
        ),
        compiler_params=pltpu.CompilerParams(
            dimension_semantics=("parallel",)),
    )(x_b, w1_b, b1_f, w2_row, b2_s)

    a = a_t[0, :N].reshape(N, 1).astype(x.dtype)
    return a, x


def init_params(key, L=512, D=256, n_classes=1, dtype=jnp.float32):
    # Deterministic synthetic init (PyTorch-Linear-like uniform ranges).
    k1, k2, k3, k4 = jax.random.split(key, 4)
    s1 = 1.0 / jnp.sqrt(L)
    s2 = 1.0 / jnp.sqrt(D)
    w1 = jax.random.uniform(k1, (L, D), dtype, -s1, s1)          # Linear(L, D) weight^T
    b1 = jax.random.uniform(k2, (1, D), dtype, -s1, s1)
    w2 = jax.random.uniform(k3, (D, n_classes), dtype, -s2, s2)  # Linear(D, 1) weight^T
    b2 = jax.random.uniform(k4, (1, n_classes), dtype, -s2, s2)
    return w1, b1, w2, b2


if __name__ == "__main__":
    L, D, n_classes = 512, 256, 1
    N = 300  # bag size: exercises multi-tile grid + padded tail (tn=128 -> 3 tiles)

    key = jax.random.PRNGKey(0)
    kx, kp = jax.random.split(key)
    x = jax.random.normal(kx, (N, L), jnp.float32)
    w1, b1, w2, b2 = init_params(kp, L=L, D=D, n_classes=n_classes)

    a, x_out = attn_net_forward(x, w1, b1, w2, b2, block_n=128)
    jax.block_until_ready((a, x_out))

    # Reference matched to the kernel's precision policy (bf16 inputs to the
    # first matmul, f32 accumulation / tanh / second layer).
    h_ref = jnp.tanh(
        jnp.dot(x.astype(jnp.bfloat16), w1.astype(jnp.bfloat16),
                preferred_element_type=jnp.float32) + b1)
    a_ref = h_ref @ w2 + b2
    # Full-f32 reference (loose check for gross errors only).
    a_ref_f32 = jnp.tanh(x @ w1 + b1) @ w2 + b2

    assert a.shape == (N, n_classes)
    assert x_out.shape == (N, L)
    assert jnp.allclose(a, a_ref, atol=1e-4, rtol=1e-3), \
        float(jnp.max(jnp.abs(a - a_ref)))
    assert jnp.allclose(a, a_ref_f32, atol=3e-2, rtol=3e-2), \
        float(jnp.max(jnp.abs(a - a_ref_f32)))
    assert jnp.array_equal(x_out, x)

    print("KERNEL_OK")
</pallas_src>

<mosaic_0001>
module attributes {stable_mosaic.version = 11 : i64} {
  func.func @attn_net_kernel(%arg0: i32, %arg1: memref<128x512xbf16, #tpu.memory_space<vmem>>, %arg2: memref<512x256xbf16, #tpu.memory_space<vmem>>, %arg3: memref<1x256xf32, #tpu.memory_space<vmem>>, %arg4: memref<1x256xf32, #tpu.memory_space<vmem>>, %arg5: memref<1x1xf32, #tpu.memory_space<smem>>, %arg6: memref<1x128xf32, #tpu.memory_space<vmem>>) attributes {dimension_semantics = [#tpu.dimension_semantics<parallel>], iteration_bounds = array<i64: 3>, scalar_prefetch = 0 : i64, scratch_operands = 0 : i64, tpu.core_type = #tpu.core_type<tc>, window_params = [{transform_indices = @transform_0, window_bounds = array<i64: 128, 512>}, {pipeline_mode = #tpu.pipeline_mode<synchronous>, transform_indices = @transform_1, window_bounds = array<i64: 512, 256>}, {pipeline_mode = #tpu.pipeline_mode<synchronous>, transform_indices = @transform_2, window_bounds = array<i64: 1, 256>}, {pipeline_mode = #tpu.pipeline_mode<synchronous>, transform_indices = @transform_3, window_bounds = array<i64: 1, 256>}, {transform_indices = @transform_4, window_bounds = array<i64: 1, 1>}, {transform_indices = @transform_5, window_bounds = array<i64: 1, 128>}]} {
    %c0 = arith.constant 0 : index
    %c0_0 = arith.constant 0 : index
    %0 = vector.load %arg1[%c0, %c0_0] : memref<128x512xbf16, #tpu.memory_space<vmem>>, vector<128x512xbf16>
    %c0_1 = arith.constant 0 : index
    %c0_2 = arith.constant 0 : index
    %1 = vector.load %arg2[%c0_1, %c0_2] : memref<512x256xbf16, #tpu.memory_space<vmem>>, vector<512x256xbf16>
    %cst = arith.constant dense<0.000000e+00> : vector<128x256xf32>
    %2 = tpu.matmul %0, %1, %cst {dimension_numbers = #tpu.dot_dimension_numbers<[1], [0], [0], [1], [0, 0, 1, 1], [], []>} : vector<128x512xbf16>, vector<512x256xbf16>, vector<128x256xf32> -> vector<128x256xf32>
    %c0_3 = arith.constant 0 : index
    %c0_4 = arith.constant 0 : index
    %3 = vector.load %arg3[%c0_3, %c0_4] : memref<1x256xf32, #tpu.memory_space<vmem>>, vector<1x256xf32>
    %4 = vector.broadcast %3 : vector<1x256xf32> to vector<128x256xf32>
    %5 = arith.addf %2, %4 : vector<128x256xf32>
    %6 = math.tanh %5 : vector<128x256xf32>
    %c0_5 = arith.constant 0 : index
    %c0_6 = arith.constant 0 : index
    %7 = vector.load %arg4[%c0_5, %c0_6] : memref<1x256xf32, #tpu.memory_space<vmem>>, vector<1x256xf32>
    %8 = vector.broadcast %7 : vector<1x256xf32> to vector<128x256xf32>
    %9 = arith.mulf %6, %8 : vector<128x256xf32>
    %cst_7 = arith.constant dense<0.000000e+00> : vector<128xf32>
    %10 = vector.multi_reduction <add>, %9, %cst_7 [1] : vector<128x256xf32> to vector<128xf32>
    %c0_8 = arith.constant 0 : index
    %c0_9 = arith.constant 0 : index
    %11 = memref.load %arg5[%c0_8, %c0_9] : memref<1x1xf32, #tpu.memory_space<smem>>
    %12 = vector.broadcast %11 : f32 to vector<128xf32>
    %13 = arith.addf %10, %12 : vector<128xf32>
    %14 = vector.shape_cast %13 : vector<128xf32> to vector<1x128xf32>
    %c0_10 = arith.constant 0 : index
    %c0_11 = arith.constant 0 : index
    %15 = vector.load %arg6[%c0_10, %c0_11] : memref<1x128xf32, #tpu.memory_space<vmem>>, vector<1x128xf32>
    tpu.vector_store %arg6[%c0_10, %c0_11], %14 {strides = array<i32>} : memref<1x128xf32, #tpu.memory_space<vmem>>, vector<1x128xf32>,
    return
  }
  func.func @transform_0(%arg0: i32) -> (i32, i32) {
    %c0_i32 = arith.constant 0 : i32
    %c0_i32_0 = arith.constant 0 : i32
    return %arg0, %c0_i32 : i32, i32
  }
  func.func @transform_1(%arg0: i32) -> (i32, i32) {
    %c0_i32 = arith.constant 0 : i32
    %c0_i32_0 = arith.constant 0 : i32
    %c0_i32_1 = arith.constant 0 : i32
    return %c0_i32, %c0_i32_0 : i32, i32
  }
  func.func @transform_2(%arg0: i32) -> (i32, i32) {
    %c0_i32 = arith.constant 0 : i32
    %c0_i32_0 = arith.constant 0 : i32
    %c0_i32_1 = arith.constant 0 : i32
    return %c0_i32, %c0_i32_0 : i32, i32
  }
  func.func @transform_3(%arg0: i32) -> (i32, i32) {
    %c0_i32 = arith.constant 0 : i32
    %c0_i32_0 = arith.constant 0 : i32
    %c0_i32_1 = arith.constant 0 : i32
    return %c0_i32, %c0_i32_0 : i32, i32
  }
  func.func @transform_4(%arg0: i32) -> (i32, i32) {
    %c0_i32 = arith.constant 0 : i32
    %c0_i32_0 = arith.constant 0 : i32
    %c0_i32_1 = arith.constant 0 : i32
    return %c0_i32, %c0_i32_0 : i32, i32
  }
  func.func @transform_5(%arg0: i32) -> (i32, i32) {
    %c0_i32 = arith.constant 0 : i32
    %c0_i32_0 = arith.constant 0 : i32
    return %c0_i32, %arg0 : i32, i32
  }
}

</mosaic_0001>

<bundles_post_ra>
// kernel: tpu_custom_call.1
= control target key start
LH: loop header
LB: loop body
LE: loop exit
PB: predicated region body
PF: predicated region fallthrough
CT: control target
= control target key end

     0   :  { %s2325_s0 = inlined_call_operand.hbm [shape: bf16[384,512], index: 0, kind: input, shape index: {}]   ;;  %s2326_s1 = inlined_call_operand.hbm [shape: bf16[512,256], index: 1, kind: input, shape index: {}]   ;;  %s2327_s2 = inlined_call_operand.vmem [shape: f32[1,256], index: 2, kind: input, shape index: {}]   ;;  %s2328_s3 = inlined_call_operand.vmem [shape: f32[1,256], index: 3, kind: input, shape index: {}]   ;;  %s2329_s4 = inlined_call_operand.<no memory space> [shape: f32[1,1], index: 4, kind: input, shape index: {}]   ;;  %s2330_s5 = inlined_call_operand.hbm [shape: f32[1,384], index: 5, kind: output, shape index: {}]  }
   0x1   :  { %10 = sst [smem:[#allocation2]] %s2329_s4 }
   0x2   :  { %11 = vsyncpa [#allocation4], 0 }
   0x3   :  { %13 = vsyncpa [#allocation4 + $0x1], 0 }
   0x4   :  { %14 = vsyncpa [#allocation7], 0 }
   0x5   :  { %15 = vsyncpa [#allocation5], 0 }
   0x6   :  { %17 = vsyncpa [#allocation5 + $0x1], 0  ;;  %s1979_s20 = smov 0   ;;  %s1981_s21 = smov 0  }
   0x7   :  { %s1983_s22 = smov 0   ;;  %s1985_s23 = smov 0  }
   0x8 LB: > { %s2000_s4 = sadd.s32 4294967295, %s1937_s23   ;;  %s1434_s24 = sadd.s32 4294967294, %s1937_s23   ;;  %s1937_s23 = sphi %s1985_s23, %s2351_s23   ;;  %s1933_s22 = sphi %s1983_s22, %s2350_s22   ;;  %s1929_s21 = sphi %s1981_s21, %s2349_s21   ;;  %s1925_s20 = sphi %s1979_s20, %s2348_s20  }
   0x9   : > { %p43_p0 = scmp.ne.s32.totalorder %s1929_s21, %s1925_s20  ;;  %p2331_p1 = scmp.eq.s32.totalorder %s2000_s4, 0 }
   0xa   : > { %p157_p3 = scmp.eq.s32.totalorder %s1434_s24, 2  ;;  %p1435_p5 = scmp.ge.s32.totalorder %s1937_s23, 1 }
   0xb   : > { %p2009_p4 = por %p2331_p1, %p43_p0  ;;  %p164_p7 = scmp.lt.s32.totalorder %s1937_s23, 4 }
   0xc   : > { %p2014_p6 = por %p157_p3, %p43_p0  ;;  %s1939_s28 = smov [#allocation6]  }
   0xd   : > { %s2335_s25 = scalar_select %p2009_p4, 1, 0 }
   0xe   : > { %s2336_s26 = scalar_select %p2014_p6, 1, 0 }
   0xf   : > { %p2019_p8 = pnand %p1435_p5, %p164_p7  ;;  %s176_s29 = sshll.u32 %s1939_s28, 4  ;;  %s177_s29 = int_to_ptr.vmem [resolvable:$true] %s176_s29 }
  0x10   : > { %s2032_s6 = sadd.s32 1, %s1937_s23   ;;  %s30_s7 = sadd.s32 1, %s1933_s22 }
  0x11   : > { %s2337_s27 = scalar_select %p2019_p8, 1, 0 }
  0x12   : > { %p1554_p9 = pneg %p2019_p8  ;;  %s27_s8 = ssub.s32 %s1937_s23, %s2032_s6 }
  0x13   : > { %s1826_s9 = scalar_lea.vmem %s177_s29, 8192  ;;  %p1834_p3 = scmp.lt.s32.totalorder %s177_s29, %s177_s29 }
  0x14   : > { %p2027_p10 = pnand %p1554_p9, %p2331_p1  ;;  %p1827_p12 = scmp.ne.s32.totalorder %s177_s29, %s1826_s9 }
  0x15   : > { %p1835_p5 = scmp.lt.s32.totalorder %s1826_s9, %s1826_s9 }
  0x16   : > { %p1817_p11 = pneg %p2027_p10 }
  0x17   : > { %p1836_p7 = por %p1835_p5, %p1834_p3 }
  0x18   : > { %p1829_p13 = pnand %p1827_p12, %p1817_p11 }
  0x1a   : > { %p1830_p0 = pneg %p1829_p13 }
  0x1c   : > { %p1837_p2 = pnand %p1836_p7, %p1830_p0 }
  0x1e   : > { %1840 = shalt.err (!%p1837_p2)
}
  0x1f   : > { %s1940_s10 = smov 128   ;;  %s1941_s11 = smov 8  }
  0x20   : > { %1557 = dma.hbm_to_vmem [thread:$0]  (!%p2027_p10), %s2326_s1, 8192, %s177_s29, [#allocation7], %s1940_s10, %s1940_s10, %s1941_s11  }
  0x21   : > { %p28_p9 = scmp.eq.s32.totalorder %s27_s8, 0  ;;  %p37_p11 = scmp.ne.s32.totalorder %s1933_s22, %s1929_s21 }
  0x22   : > { %p38_p12 = scmp.eq.s32.totalorder %s1937_s23, 0  ;;  %p1567_p2 = scmp.lt.s32.totalorder %s1937_s23, 3 }
  0x23   : > { %s2049_s14 = scalar_select %p28_p9, %s1933_s22, %s30_s7  }
  0x24   : > { %p39_p13 = por %p38_p12, %p37_p11  ;;  %p2339_p0 = scmp.eq.s32.totalorder %s2000_s4, 2 }
  0x25   : > { %s199_s16 = sand.u32 1, %s1933_s22   ;;  %s1545_s17 = sshll.u32 %s1937_s23, 12 }
  0x26   : > { %p2053_p3 = por %p2339_p0, %p37_p11  ;;  %s1438_s18 = sshll.u32 %s199_s16, 8 }
  0x27   : > { %s2062_s28 = scalar_lea.hbm %s2325_s0, %s1545_s17  ;;  %s203_s29 = scalar_lea.vmem [#allocation3], %s1438_s18 }
  0x28   : > { %s2340_s15 = scalar_select %p2053_p3, 1, 0 }
  0x29   : > { %s211_s30 = sshll.u32 %s203_s29, 4  ;;  %p2064_p10 = pnand %p1567_p2, %p39_p13  ;;  %s2068_s30 = int_to_ptr.vmem [resolvable:$true] %s211_s30 }
  0x2a   : > { %s2070_s8 = scalar_lea.sflag [#allocation4], %s199_s16  ;;  %s1841_s9 = scalar_lea.hbm %s2062_s28, 4096 }
  0x2b   : > { %p1842_p5 = scmp.ne.s32.totalorder %s2062_s28, %s1841_s9  ;;  %p1843_p7 = pneg %p2064_p10 }
  0x2c   : > { %s1846_s12 = scalar_lea.hbm %s2325_s0, 12288  ;;  %p1847_p12 = scmp.lt.s32.totalorder %s2062_s28, %s2325_s0 }
  0x2d   : > { %p1844_p9 = pnand %p1843_p7, %p1842_p5  ;;  %p1848_p2 = scmp.lt.s32.totalorder %s1846_s12, %s1841_s9 }
  0x2f   : > { %p1845_p11 = pneg %p1844_p9  ;;  %p1849_p13 = por %p1848_p2, %p1847_p12 }
  0x31   : > { %p1850_p0 = pnand %p1849_p13, %p1845_p11 }
  0x33   : > { %1853 = shalt.err (!%p1850_p0)
}
  0x34   : > { %s1854_s16 = scalar_lea.vmem %s2068_s30, 4096  ;;  %s1942_s18 = smov [#allocation3]  }
  0x35   : > { %p1855_p1 = scmp.ne.s32.totalorder %s2068_s30, %s1854_s16  ;;  %s1859_s19 = sshll.u32 %s1942_s18, 4  ;;  %s1860_s19 = int_to_ptr.vmem [resolvable:$false] %s1859_s19 }
  0x36   : > { %s1861_s24 = scalar_lea.vmem %s1860_s19, 8192  ;;  %p1862_p9 = scmp.lt.s32.totalorder %s2068_s30, %s1860_s19 }
  0x37   : > { %p1857_p6 = pnand %p1855_p1, %p1843_p7  ;;  %p1863_p3 = scmp.lt.s32.totalorder %s1861_s24, %s1854_s16 }
  0x39   : > { %p1858_p5 = pneg %p1857_p6  ;;  %p1864_p4 = por %p1863_p3, %p1862_p9 }
  0x3b   : > { %p1865_p8 = pnand %p1864_p4, %p1858_p5 }
  0x3d   : > { %1868 = shalt.err (!%p1865_p8)
}
  0x3e   : > { %s1943_s29 = smov 256   ;;  %s1944_s9 = smov 16  }
  0x3f   : > { %1561 = dma.hbm_to_vmem [thread:$0]  (!%p2064_p10), %s2062_s28, 4096, %s2068_s30, %s2070_s8, %s1943_s29, %s1943_s29, %s1944_s9  }
  0x40   : > { %p2342_p1 = scmp.ne.s32.totalorder %s2337_s27, 0 }
  0x41   : > { %s2094_s10 = sand.u32 (!%p2342_p1), 1, %s1929_s21   ;;  %p2343_p4 = scmp.ne.s32.totalorder (!%p2342_p1), %s2335_s25, 0 }
  0x42   : > { %223 = sbr.rel (%p2342_p1) target bundleno = 573 (0x23d), region = 40  ;;  %s1443_s11 = sshll.u32 (!%p2342_p1), %s2094_s10, 8 }
  0x43   : > { %s226_s12 = scalar_lea.sflag (!%p2342_p1), [#allocation4], %s2094_s10  ;;  %s2098_s13 = scalar_lea.vmem (!%p2342_p1), [#allocation3], %s1443_s11 }
  0x47   : > { %1912 = dma.done.wait (%p2343_p4), %s226_s12, 4096  }
  0x48   : > { %1914 = vsyncadd (%p2343_p4), %s226_s12, 4294963200  ;;  %p2344_p6 = scmp.eq.s32.totalorder %s2000_s4, 0 }
  0x4a   : > { %1916 = dma.done.wait (%p2344_p6), [#allocation7], 8192   ;;  %p2345_p8 = pmov %p2344_p6 }
  0x4b   : > { %v1607_v0 = vld [vmem:[#allocation6 + $0x74] ss:$8 sps:$4 sm:$0xff]   ;;  %v1611_v2 = vld [vmem:[#allocation6 + $0x70] ss:$8 sps:$4 sm:$0xff]   ;;  %v1613_v4 = vld [vmem:[#allocation6 + $0x64] ss:$8 sps:$4 sm:$0xff]  }
  0x4c   : > { %1918 = vsyncadd (%p2345_p8), [#allocation7], 4294959104  ;;  %v1609_v1 = vld [vmem:[#allocation6 + $0x174] ss:$8 sps:$4 sm:$0xff]   ;;  %848 = vmatprep.subr.bf16.mxu0 %v1607_v0  ;;  %v1612_v3 = vld [vmem:[#allocation6 + $0x170] ss:$8 sps:$4 sm:$0xff]  }
  0x4d   : > { %961 = vmatprep.subr.bf16.mxu1 %v1609_v1  ;;  %849 = vmatpush1.bf16.msra.mxu0 %v1611_v2  ;;  %v1615_v5 = vld [vmem:[#allocation6 + $0x164] ss:$8 sps:$4 sm:$0xff]   ;;  %v1617_v6 = vld [vmem:[#allocation6 + $0x60] ss:$8 sps:$4 sm:$0xff]   ;;  %v1619_v8 = vld [vmem:[#allocation6 + $0x54] ss:$8 sps:$4 sm:$0xff]  }
  0x4e   : > { %962 = vmatpush1.bf16.msra.mxu1 %v1612_v3  ;;  %850 = vmatprep.subr.bf16.mxu0 %v1613_v4  ;;  %v1618_v7 = vld [vmem:[#allocation6 + $0x160] ss:$8 sps:$4 sm:$0xff]   ;;  %v1621_v9 = vld [vmem:[#allocation6 + $0x154] ss:$8 sps:$4 sm:$0xff]   ;;  %v1623_v10 = vld [vmem:[#allocation6 + $0x50] ss:$8 sps:$4 sm:$0xff]  }
  0x4f   : > { %963 = vmatprep.subr.bf16.mxu1 %v1615_v5  ;;  %v1624_v11 = vld [vmem:[#allocation6 + $0x150] ss:$8 sps:$4 sm:$0xff]   ;;  %v1625_v12 = vld [vmem:[#allocation6 + $0x44] ss:$8 sps:$4 sm:$0xff]   ;;  %v1629_v14 = vld [vmem:[#allocation6 + $0x40] ss:$8 sps:$4 sm:$0xff]  }
  0x50   : > { %v1627_v13 = vld [vmem:[#allocation6 + $0x144] ss:$8 sps:$4 sm:$0xff]   ;;  %v1630_v15 = vld [vmem:[#allocation6 + $0x140] ss:$8 sps:$4 sm:$0xff]   ;;  %v1631_v16 = vld [vmem:[#allocation6 + $0x34] ss:$8 sps:$4 sm:$0xff]  }
  0x51   : > { %851 = vmatpush1.bf16.msra.mxu0 %v1617_v6  ;;  %v1633_v17 = vld [vmem:[#allocation6 + $0x134] ss:$8 sps:$4 sm:$0xff]   ;;  %v1635_v18 = vld [vmem:[#allocation6 + $0x30] ss:$8 sps:$4 sm:$0xff]   ;;  %v1637_v20 = vld [vmem:[#allocation6 + $0x24] ss:$8 sps:$4 sm:$0xff]  }
  0x52   : > { %964 = vmatpush1.bf16.msra.mxu1 %v1618_v7  ;;  %852 = vmatprep.subr.bf16.mxu0 %v1619_v8  ;;  %v1636_v19 = vld [vmem:[#allocation6 + $0x130] ss:$8 sps:$4 sm:$0xff]   ;;  %v1639_v21 = vld [vmem:[#allocation6 + $0x124] ss:$8 sps:$4 sm:$0xff]   ;;  %v1641_v22 = vld [vmem:[#allocation6 + $0x20] ss:$8 sps:$4 sm:$0xff]  }
  0x53   : > { %965 = vmatprep.subr.bf16.mxu1 %v1621_v9  ;;  %v1642_v23 = vld [vmem:[#allocation6 + $0x120] ss:$8 sps:$4 sm:$0xff]   ;;  %v1643_v24 = vld [vmem:[#allocation6 + $0x14] ss:$8 sps:$4 sm:$0xff]   ;;  %v1647_v26 = vld [vmem:[#allocation6 + $0x10] ss:$8 sps:$4 sm:$0xff]  }
  0x54   : > { %v1645_v25 = vld [vmem:[#allocation6 + $0x114] ss:$8 sps:$4 sm:$0xff]   ;;  %v1648_v27 = vld [vmem:[#allocation6 + $0x110] ss:$8 sps:$4 sm:$0xff]   ;;  %v1649_v28 = vld [vmem:[#allocation6 + $0x4] ss:$8 sps:$4 sm:$0xff]  }
  0x55   : > { %853 = vmatpush1.bf16.msra.mxu0 %v1623_v10  ;;  %v1651_v29 = vld [vmem:[#allocation6 + $0x104] ss:$8 sps:$4 sm:$0xff]   ;;  %v1653_v30 = vld [vmem:[#allocation6] ss:$8 sps:$4 sm:$0xff]   ;;  %v1655_v32 = vld [vmem:[#allocation6 + $0xf4] ss:$8 sps:$4 sm:$0xff]  }
  0x56   : > { %966 = vmatpush1.bf16.msra.mxu1 %v1624_v11  ;;  %854 = vmatprep.subr.bf16.mxu0 %v1625_v12  ;;  %v1654_v31 = vld [vmem:[#allocation6 + $0x100] ss:$8 sps:$4 sm:$0xff]   ;;  %v1657_v33 = vld [vmem:[#allocation6 + $0x1f4] ss:$8 sps:$4 sm:$0xff]   ;;  %v1659_v34 = vld [vmem:[#allocation6 + $0xf0] ss:$8 sps:$4 sm:$0xff]  }
  0x57   : > { %967 = vmatprep.subr.bf16.mxu1 %v1627_v13  ;;  %v1660_v35 = vld [vmem:[#allocation6 + $0x1f0] ss:$8 sps:$4 sm:$0xff]   ;;  %v1661_v36 = vld [vmem:[#allocation6 + $0xe4] ss:$8 sps:$4 sm:$0xff]   ;;  %v1665_v38 = vld [vmem:[#allocation6 + $0xe0] ss:$8 sps:$4 sm:$0xff]  }
  0x58   : > { %v1663_v37 = vld [vmem:[#allocation6 + $0x1e4] ss:$8 sps:$4 sm:$0xff]   ;;  %v1666_v39 = vld [vmem:[#allocation6 + $0x1e0] ss:$8 sps:$4 sm:$0xff]   ;;  %v1667_v40 = vld [vmem:[#allocation6 + $0xd4] ss:$8 sps:$4 sm:$0xff]  }
  0x59   : > { %855 = vmatpush1.bf16.msra.mxu0 %v1629_v14  ;;  %v1669_v41 = vld [vmem:[#allocation6 + $0x1d4] ss:$8 sps:$4 sm:$0xff]   ;;  %v1671_v42 = vld [vmem:[#allocation6 + $0xd0] ss:$8 sps:$4 sm:$0xff]   ;;  %v1673_v44 = vld [vmem:[#allocation6 + $0xc4] ss:$8 sps:$4 sm:$0xff]  }
  0x5a   : > { %968 = vmatpush1.bf16.msra.mxu1 %v1630_v15  ;;  %856 = vmatprep.subr.bf16.mxu0 %v1631_v16  ;;  %v1672_v43 = vld [vmem:[#allocation6 + $0x1d0] ss:$8 sps:$4 sm:$0xff]   ;;  %v1675_v45 = vld [vmem:[#allocation6 + $0x1c4] ss:$8 sps:$4 sm:$0xff]   ;;  %v1677_v46 = vld [vmem:[#allocation6 + $0xc0] ss:$8 sps:$4 sm:$0xff]  }
  0x5b   : > { %969 = vmatprep.subr.bf16.mxu1 %v1633_v17  ;;  %v1678_v47 = vld [vmem:[#allocation6 + $0x1c0] ss:$8 sps:$4 sm:$0xff]   ;;  %v1679_v48 = vld [vmem:[#allocation6 + $0xb4] ss:$8 sps:$4 sm:$0xff]   ;;  %v1683_v52 = vld [vmem:[#allocation6 + $0xb0] ss:$8 sps:$4 sm:$0xff]  }
  0x5c   : > { %v1705_v49 = vld [vmem:[%s2098_s13 + $0x4] ss:$16 sps:$4 sm:$0xff]   ;;  %v1708_v51 = vld [vmem:[%s2098_s13 + $0xc] ss:$16 sps:$4 sm:$0xff]   ;;  %v1684_v53 = vld [vmem:[#allocation6 + $0x1b0] ss:$8 sps:$4 sm:$0xff]  }
  0x5d   : > { %857 = vmatpush1.bf16.msra.mxu0 %v1635_v18  ;;  %v1681_v50 = vld [vmem:[#allocation6 + $0x1b4] ss:$8 sps:$4 sm:$0xff]   ;;  %880 = vmatprep.mubr.bf16.mxu0 %v1705_v49  ;;  %v1685_v54 = vld [vmem:[#allocation6 + $0xa4] ss:$8 sps:$4 sm:$0xff]   ;;  %v1689_v56 = vld [vmem:[#allocation6 + $0xa0] ss:$8 sps:$4 sm:$0xff]  }
  0x5e   : > { %970 = vmatpush1.bf16.msra.mxu1 %v1636_v19  ;;  %858 = vmatprep.subr.bf16.mxu0 %v1637_v20  ;;  %v1687_v55 = vld [vmem:[#allocation6 + $0x1a4] ss:$8 sps:$4 sm:$0xff]   ;;  %v1690_v57 = vld [vmem:[#allocation6 + $0x1a0] ss:$8 sps:$4 sm:$0xff]   ;;  %v1691_v58 = vld [vmem:[#allocation6 + $0x94] ss:$8 sps:$4 sm:$0xff]  }
  0x5f   : > { %971 = vmatprep.subr.bf16.mxu1 %v1639_v21  ;;  %993 = vmatprep.mubr.bf16.mxu1 %v1708_v51  ;;  %v1693_v59 = vld [vmem:[#allocation6 + $0x194] ss:$8 sps:$4 sm:$0xff]   ;;  %v1695_v60 = vld [vmem:[#allocation6 + $0x90] ss:$8 sps:$4 sm:$0xff]   ;;  %v1697_v62 = vld [vmem:[#allocation6 + $0x84] ss:$8 sps:$4 sm:$0xff]  }
  0x60   : > { %v1696_v61 = vld [vmem:[#allocation6 + $0x190] ss:$8 sps:$4 sm:$0xff]   ;;  %v1699_v63 = vld [vmem:[#allocation6 + $0x184] ss:$8 sps:$4 sm:$0xff]   ;;  %v1701_v0 = vld [vmem:[#allocation6 + $0x80] ss:$8 sps:$4 sm:$0xff]  }
  0x61   : > { %859 = vmatpush1.bf16.msra.mxu0 %v1641_v22  ;;  %v1702_v1 = vld [vmem:[#allocation6 + $0x180] ss:$8 sps:$4 sm:$0xff]   ;;  %v1709_v4 = vld [vmem:[%s2098_s13 + $0x24] ss:$16 sps:$4 sm:$0xff]   ;;  %v1711_v5 = vld [vmem:[%s2098_s13 + $0x2c] ss:$16 sps:$4 sm:$0xff]  }
  0x62   : > { %972 = vmatpush1.bf16.msra.mxu1 %v1642_v23  ;;  %860 = vmatprep.subr.bf16.mxu0 %v1643_v24  ;;  %v1703_v2 = vld [vmem:[%s2098_s13] ss:$16 sps:$4 sm:$0xff]   ;;  %v1706_v3 = vld [vmem:[%s2098_s13 + $0x8] ss:$16 sps:$4 sm:$0xff]   ;;  %v1715_v8 = vld [vmem:[%s2098_s13 + $0x44] ss:$16 sps:$4 sm:$0xff]  }
  0x63   : > { %973 = vmatprep.subr.bf16.mxu1 %v1645_v25  ;;  %v1713_v6 = vld [vmem:[%s2098_s13 + $0x20] ss:$16 sps:$4 sm:$0xff]   ;;  %v1714_v7 = vld [vmem:[%s2098_s13 + $0x28] ss:$16 sps:$4 sm:$0xff]   ;;  %v1717_v9 = vld [vmem:[%s2098_s13 + $0x4c] ss:$16 sps:$4 sm:$0xff]  }
  0x64   : > { %v1719_v10 = vld [vmem:[%s2098_s13 + $0x40] ss:$16 sps:$4 sm:$0xff]   ;;  %v1720_v11 = vld [vmem:[%s2098_s13 + $0x48] ss:$16 sps:$4 sm:$0xff]   ;;  %v1721_v12 = vld [vmem:[%s2098_s13 + $0x64] ss:$16 sps:$4 sm:$0xff]  }
  0x65   : > { %861 = vmatpush1.bf16.msra.mxu0 %v1647_v26  ;;  %v1723_v13 = vld [vmem:[%s2098_s13 + $0x6c] ss:$16 sps:$4 sm:$0xff]   ;;  %v1725_v14 = vld [vmem:[%s2098_s13 + $0x60] ss:$16 sps:$4 sm:$0xff]   ;;  %v1726_v15 = vld [vmem:[%s2098_s13 + $0x68] ss:$16 sps:$4 sm:$0xff]  }
  0x66   : > { %974 = vmatpush1.bf16.msra.mxu1 %v1648_v27  ;;  %862 = vmatprep.subr.bf16.mxu0 %v1649_v28  ;;  %v1727_v16 = vld [vmem:[%s2098_s13 + $0x84] ss:$16 sps:$4 sm:$0xff]   ;;  %v1729_v17 = vld [vmem:[%s2098_s13 + $0x8c] ss:$16 sps:$4 sm:$0xff]   ;;  %v1731_v18 = vld [vmem:[%s2098_s13 + $0x80] ss:$16 sps:$4 sm:$0xff]  }
  0x67   : > { %975 = vmatprep.subr.bf16.mxu1 %v1651_v29  ;;  %v1732_v19 = vld [vmem:[%s2098_s13 + $0x88] ss:$16 sps:$4 sm:$0xff]   ;;  %v1733_v20 = vld [vmem:[%s2098_s13 + $0xa4] ss:$16 sps:$4 sm:$0xff]   ;;  %v1735_v21 = vld [vmem:[%s2098_s13 + $0xac] ss:$16 sps:$4 sm:$0xff]  }
  0x68   : > { %v1737_v22 = vld [vmem:[%s2098_s13 + $0xa0] ss:$16 sps:$4 sm:$0xff]   ;;  %v1738_v23 = vld [vmem:[%s2098_s13 + $0xa8] ss:$16 sps:$4 sm:$0xff]   ;;  %v1739_v24 = vld [vmem:[%s2098_s13 + $0xc4] ss:$16 sps:$4 sm:$0xff]  }
  0x69   : > { %863 = vmatpush1.bf16.msra.mxu0 %v1653_v30  ;;  %v1741_v25 = vld [vmem:[%s2098_s13 + $0xcc] ss:$16 sps:$4 sm:$0xff]   ;;  %v1743_v26 = vld [vmem:[%s2098_s13 + $0xc0] ss:$16 sps:$4 sm:$0xff]   ;;  %v1744_v27 = vld [vmem:[%s2098_s13 + $0xc8] ss:$16 sps:$4 sm:$0xff]  }
  0x6a   : > { %976 = vmatpush1.bf16.msra.mxu1 %v1654_v31  ;;  %864 = vmatprep.subr.bf16.mxu0 %v1655_v32  ;;  %v1745_v28 = vld [vmem:[%s2098_s13 + $0xe4] ss:$16 sps:$4 sm:$0xff]   ;;  %v1747_v29 = vld [vmem:[%s2098_s13 + $0xec] ss:$16 sps:$4 sm:$0xff]   ;;  %v1749_v30 = vld [vmem:[%s2098_s13 + $0xe0] ss:$16 sps:$4 sm:$0xff]   ;;  %v358_v32 = vlaneseq }
  0x6b   : > { %977 = vmatprep.subr.bf16.mxu1 %v1657_v33  ;;  %v1750_v31 = vld [vmem:[%s2098_s13 + $0xe8] ss:$16 sps:$4 sm:$0xff]   ;;  %s1198_s7 = sld [smem:[#allocation2]]  ;;  %vm1243_vm0 = vcmask 130112   ;;  %vm1250_vm1 = vcmask 195712   ;;  %vm1257_vm2 = vcmask 261312  }
  0x6c   : > { %v2141_v33 = vshrl.u32 %v358_v32, 7  ;;  %vm1264_vm3 = vcmask 326912   ;;  %vm1271_vm4 = vcmask 392512   ;;  %vm1278_vm5 = vcmask 458112   ;;  %s1541_s8 = sshll.u32 %s2000_s4, 4  ;;  %s258_s17 = scalar_lea.vmem [#allocation8], %s2094_s10 }
  0x6d   : > { %865 = vmatpush2.bf16.msra.mxu0 %v1659_v34  ;;  %vm1285_vm6 = vcmask 523712   ;;  %vm1292_vm7 = vcmask 589312   ;;  %vm1299_vm8 = vcmask 654912   ;;  %vm1306_vm9 = vcmask 720512   ;;  %s1358_s16 = sshll.u32 %s258_s17, 4  ;;  %s2289_s24 = scalar_lea.hbm %s2330_s5, %s1541_s8  ;;  %s1359_s16 = int_to_ptr.vmem [resolvable:$true] %s1358_s16 }
  0x6e   : > { %978 = vmatpush2.bf16.msra.mxu1 %v1660_v35  ;;  %866 = vmatprep.subr.bf16.mxu0 %v1661_v36  ;;  %v360_v34 = vsub.s32 0, %v2141_v33  ;;  %v356_v35 = vld [vmem:[%s2327_s2] sm:$0x3]  ;;  %v364_v36 = vsub.s32 1, %v2141_v33  ;;  %vm1313_vm10 = vcmask 786112   ;;  %vm1320_vm11 = vcmask 851712  }
  0x6f   : > { %979 = vmatprep.subr.bf16.mxu1 %v1663_v37  ;;  %vm1327_vm12 = vcmask 917312   ;;  %vm1334_vm13 = vcmask 982912   ;;  %vm1341_vm14 = vcmask 1048512   ;;  %s1346_s29 = scalar_lea.sflag [#allocation5], %s2094_s10  ;;  %s1869_s9 = scalar_lea.vmem %s1359_s16, 16 }
  0x70   : > { %v2148_v37 = vrot.slane %v356_v35, %v360_v34  ;;  %p1870_p3 = scmp.ne.s32.totalorder %s1359_s16, %s1869_s9  ;;  %p2346_p10 = scmp.ne.s32.totalorder %s2340_s15, 0 }
  0x71   : > { %867 = vmatpush2.bf16.msra.mxu0 %v1665_v38  ;;  %v2150_v38 = vrot.slane %v356_v35, %v364_v36  ;;  %s1945_s4 = smov [#allocation8]  }
  0x72   : > { %980 = vmatpush2.bf16.msra.mxu1 %v1666_v39  ;;  %868 = vmatprep.subr.bf16.mxu0 %v1667_v40  ;;  %p1871_p7 = pnand %p1870_p3, %p2346_p10  ;;  %s1873_s11 = sshll.u32 %s1945_s4, 4  ;;  %s1874_s11 = int_to_ptr.vmem [resolvable:$false] %s1873_s11 }
  0x73   : > { %981 = vmatprep.subr.bf16.mxu1 %v1669_v41  ;;  %s1875_s12 = scalar_lea.vmem %s1874_s11, 32  ;;  %p1876_p12 = scmp.lt.s32.totalorder %s1359_s16, %s1874_s11 }
  0x74   : > { %p1872_p11 = pneg %p1871_p7  ;;  %p1877_p2 = scmp.lt.s32.totalorder %s1875_s12, %s1869_s9 }
  0x75   : > { %869 = vmatpush2.bf16.msra.mxu0 %v1671_v42 }
  0x76   : > { %982 = vmatpush2.bf16.msra.mxu1 %v1672_v43  ;;  %870 = vmatprep.subr.bf16.mxu0 %v1673_v44  ;;  %p1878_p13 = por %p1877_p2, %p1876_p12 }
  0x77   : > { %983 = vmatprep.subr.bf16.mxu1 %v1675_v45 }
  0x78   : > { %p1879_p0 = pnand %p1878_p13, %p1872_p11 }
  0x79   : > { %871 = vmatpush2.bf16.msra.mxu0 %v1677_v46 }
  0x7a   : > { %984 = vmatpush2.bf16.msra.mxu1 %v1678_v47  ;;  %872 = vmatprep.subr.bf16.mxu0 %v1679_v48 }
  0x7b   : > { %985 = vmatprep.subr.bf16.mxu1 %v1681_v50 }
  0x7d   : > { %873 = vmatpush2.bf16.msra.mxu0 %v1683_v52 }
  0x7e   : > { %986 = vmatpush2.bf16.msra.mxu1 %v1684_v53  ;;  %874 = vmatprep.subr.bf16.mxu0 %v1685_v54 }
  0x7f   : > { %987 = vmatprep.subr.bf16.mxu1 %v1687_v55 }
  0x81   : > { %875 = vmatpush2.bf16.msra.mxu0 %v1689_v56 }
  0x82   : > { %988 = vmatpush2.bf16.msra.mxu1 %v1690_v57  ;;  %876 = vmatprep.subr.bf16.mxu0 %v1691_v58 }
  0x83   : > { %989 = vmatprep.subr.bf16.mxu1 %v1693_v59 }
  0x85   : > { %877 = vmatpush2.bf16.msra.mxu0 %v1695_v60 }
  0x86   : > { %990 = vmatpush2.bf16.msra.mxu1 %v1696_v61  ;;  %878 = vmatprep.subr.bf16.mxu0 %v1697_v62 }
  0x87   : > { %991 = vmatprep.subr.bf16.mxu1 %v1699_v63 }
  0x89   : > { %879 = vmatpush2.bf16.msra.mxu0 %v1701_v0 }
  0x8a   : > { %992 = vmatpush2.bf16.msra.mxu1 %v1702_v1 }
  0x8c   : > { %881 = vmatmul.mubr.bf16.vlgmr.msra.gmra.mxu0 %v1703_v2  ;;  %v1106_v2 = vld [vmem:[%s2328_s3] sm:$0x3] }
  0x8d   : > { %994 = vmatmul.mubr.bf16.vlgmr.msra.gmra.mxu1 %v1706_v3  ;;  %890 = vmatprep.mubr.bf16.mxu0 %v1709_v4 }
  0x8e   : > { %1003 = vmatprep.mubr.bf16.mxu1 %v1711_v5 }
  0x94   : > { %891 = vmatmul.mubr.bf16.gmra.mxu0 %v1713_v6 }
  0x95   : > { %1004 = vmatmul.mubr.bf16.gmra.mxu1 %v1714_v7  ;;  %900 = vmatprep.mubr.bf16.mxu0 %v1715_v8 }
  0x96   : > { %1013 = vmatprep.mubr.bf16.mxu1 %v1717_v9  ;;  %v2163_v9 = vrot.slane %v1106_v2, %v360_v34 }
  0x9c   : > { %901 = vmatmul.mubr.bf16.gmra.mxu0 %v1719_v10 }
  0x9d   : > { %1014 = vmatmul.mubr.bf16.gmra.mxu1 %v1720_v11  ;;  %910 = vmatprep.mubr.bf16.mxu0 %v1721_v12  ;;  %v2166_v12 = vrot.slane %v1106_v2, %v364_v36 }
  0x9e   : > { %1023 = vmatprep.mubr.bf16.mxu1 %v1723_v13 }
  0xa4   : > { %911 = vmatmul.mubr.bf16.gmra.mxu0 %v1725_v14 }
  0xa5   : > { %1024 = vmatmul.mubr.bf16.gmra.mxu1 %v1726_v15  ;;  %920 = vmatprep.mubr.bf16.mxu0 %v1727_v16 }
  0xa6   : > { %1033 = vmatprep.mubr.bf16.mxu1 %v1729_v17 }
  0xac   : > { %921 = vmatmul.mubr.bf16.gmra.mxu0 %v1731_v18 }
  0xad   : > { %1034 = vmatmul.mubr.bf16.gmra.mxu1 %v1732_v19  ;;  %930 = vmatprep.mubr.bf16.mxu0 %v1733_v20 }
  0xae   : > { %1043 = vmatprep.mubr.bf16.mxu1 %v1735_v21 }
  0xb4   : > { %931 = vmatmul.mubr.bf16.gmra.mxu0 %v1737_v22 }
  0xb5   : > { %1044 = vmatmul.mubr.bf16.gmra.mxu1 %v1738_v23  ;;  %940 = vmatprep.mubr.bf16.mxu0 %v1739_v24 }
  0xb6   : > { %1053 = vmatprep.mubr.bf16.mxu1 %v1741_v25 }
  0xbc   : > { %941 = vmatmul.mubr.bf16.gmra.mxu0 %v1743_v26 }
  0xbd   : > { %1054 = vmatmul.mubr.bf16.gmra.mxu1 %v1744_v27  ;;  %950 = vmatprep.mubr.bf16.mxu0 %v1745_v28 }
  0xbe   : > { %1063 = vmatprep.mubr.bf16.mxu1 %v1747_v29 }
  0xc4   : > { %951 = vmatmul.mubr.bf16.gmra.mxu0 %v1749_v30 }
  0xc5   : > { %1064 = vmatmul.mubr.bf16.gmra.mxu1 %v1750_v31 }
 0x14c   : > { %v882_v39 = vpop.f32.mrf.mxu0 }
 0x14d   : > { %v995_v40 = vpop.f32.mrf.mxu1  ;;  %v883_v41 = vadd.f32 %v882_v39, %v2148_v37 }
 0x14e   : > { %v884_v42 = vpop.f32.mrf.mxu0 }
 0x14f   : > { %v997_v43 = vpop.f32.mrf.mxu1  ;;  %v996_v44 = vadd.f32 %v995_v40, %v883_v41  ;;  %v885_v45 = vadd.f32 %v884_v42, %v2150_v38 }
 0x150   : > { %v886_v46 = vpop.f32.mrf.mxu0 }
 0x151   : > { %v999_v47 = vpop.f32.mrf.mxu1  ;;  %1751 = vtanh.f32 %v996_v44  ;;  %v998_v48 = vadd.f32 %v997_v43, %v885_v45  ;;  %v887_v49 = vadd.f32 %v886_v46, %v2148_v37 }
 0x152   : > { %v888_v50 = vpop.f32.mrf.mxu0 }
 0x153   : > { %v1001_v51 = vpop.f32.mrf.mxu1  ;;  %1753 = vtanh.f32 %v998_v48  ;;  %v1000_v52 = vadd.f32 %v999_v47, %v887_v49  ;;  %v889_v53 = vadd.f32 %v888_v50, %v2150_v38 }
 0x154   : > { %v892_v54 = vpop.f32.mrf.mxu0 }
 0x155   : > { %v1005_v55 = vpop.f32.mrf.mxu1  ;;  %1755 = vtanh.f32 %v1000_v52  ;;  %v1002_v56 = vadd.f32 %v1001_v51, %v889_v53  ;;  %v893_v57 = vadd.f32 %v892_v54, %v2148_v37 }
 0x156   : > { %v894_v58 = vpop.f32.mrf.mxu0 }
 0x157   : > { %v1007_v59 = vpop.f32.mrf.mxu1  ;;  %1757 = vtanh.f32 %v1002_v56  ;;  %v1006_v60 = vadd.f32 %v1005_v55, %v893_v57  ;;  %v895_v61 = vadd.f32 %v894_v58, %v2150_v38 }
 0x158   : > { %v896_v62 = vpop.f32.mrf.mxu0 }
 0x159   : > { %v1009_v63 = vpop.f32.mrf.mxu1  ;;  %1759 = vtanh.f32 %v1006_v60  ;;  %v1008_v0 = vadd.f32 %v1007_v59, %v895_v61  ;;  %v897_v1 = vadd.f32 %v896_v62, %v2148_v37 }
 0x15a   : > { %v898_v3 = vpop.f32.mrf.mxu0 }
 0x15b   : > { %v1011_v4 = vpop.f32.mrf.mxu1  ;;  %1761 = vtanh.f32 %v1008_v0  ;;  %v1010_v5 = vadd.f32 %v1009_v63, %v897_v1  ;;  %v899_v6 = vadd.f32 %v898_v3, %v2150_v38 }
 0x15c   : > { %v902_v7 = vpop.f32.mrf.mxu0 }
 0x15d   : > { %v1015_v8 = vpop.f32.mrf.mxu1  ;;  %1763 = vtanh.f32 %v1010_v5  ;;  %v1012_v10 = vadd.f32 %v1011_v4, %v899_v6  ;;  %v903_v11 = vadd.f32 %v902_v7, %v2148_v37 }
 0x15e   : > { %v1752_v13 = vpop.eup %1751  ;;  %v904_v14 = vpop.f32.mrf.mxu0 }
 0x15f   : > { %v1017_v15 = vpop.f32.mrf.mxu1  ;;  %1765 = vtanh.f32 %v1012_v10  ;;  %v1016_v16 = vadd.f32 %v1015_v8, %v903_v11  ;;  %v905_v17 = vadd.f32 %v904_v14, %v2150_v38  ;;  %v1118_v21 = vmul.f32 %v1752_v13, %v2163_v9 }
 0x160   : > { %v1754_v18 = vpop.eup %1753  ;;  %v906_v19 = vpop.f32.mrf.mxu0 }
 0x161   : > { %v1019_v20 = vpop.f32.mrf.mxu1  ;;  %1767 = vtanh.f32 %v1016_v16  ;;  %v1018_v22 = vadd.f32 %v1017_v15, %v905_v17  ;;  %v907_v23 = vadd.f32 %v906_v19, %v2148_v37  ;;  %v1119_v24 = vmul.f32 %v1754_v18, %v2166_v12 }
 0x162   : > { %v1756_v25 = vpop.eup %1755  ;;  %v908_v26 = vpop.f32.mrf.mxu0 }
 0x163   : > { %v1021_v27 = vpop.f32.mrf.mxu1  ;;  %1769 = vtanh.f32 %v1018_v22  ;;  %v1020_v28 = vadd.f32 %v1019_v20, %v907_v23  ;;  %v909_v29 = vadd.f32 %v908_v26, %v2150_v38  ;;  %v1150_v30 = vadd.f32 %v1119_v24, %v1118_v21 }
 0x164   : > { %v1758_v31 = vpop.eup %1757  ;;  %v912_v34 = vpop.f32.mrf.mxu0  ;;  %v1120_v36 = vmul.f32 %v1756_v25, %v2163_v9 }
 0x165   : > { %v1025_v35 = vpop.f32.mrf.mxu1  ;;  %1771 = vtanh.f32 %v1020_v28  ;;  %v1022_v39 = vadd.f32 %v1021_v27, %v909_v29  ;;  %v913_v40 = vadd.f32 %v912_v34, %v2148_v37  ;;  %1151 = vadd.xlane.f32.xlu0 %v1150_v30  ;;  %v1121_v41 = vmul.f32 %v1758_v31, %v2166_v12 }
 0x166   : > { %v1760_v42 = vpop.eup %1759  ;;  %v914_v43 = vpop.f32.mrf.mxu0 }
 0x167   : > { %v1027_v44 = vpop.f32.mrf.mxu1  ;;  %1773 = vtanh.f32 %v1022_v39  ;;  %v1026_v45 = vadd.f32 %v1025_v35, %v913_v40  ;;  %v915_v46 = vadd.f32 %v914_v43, %v2150_v38  ;;  %v1153_v47 = vadd.f32 %v1121_v41, %v1120_v36 }
 0x168   : > { %v1762_v48 = vpop.eup %1761  ;;  %v916_v49 = vpop.f32.mrf.mxu0  ;;  %v1122_v51 = vmul.f32 %v1760_v42, %v2163_v9 }
 0x169   : > { %v1029_v50 = vpop.f32.mrf.mxu1  ;;  %1775 = vtanh.f32 %v1026_v45  ;;  %v1028_v52 = vadd.f32 %v1027_v44, %v915_v46  ;;  %v917_v53 = vadd.f32 %v916_v49, %v2148_v37  ;;  %1154 = vadd.xlane.f32.xlu0 %v1153_v47  ;;  %v1123_v54 = vmul.f32 %v1762_v48, %v2166_v12 }
 0x16a   : > { %v1764_v55 = vpop.eup %1763  ;;  %v918_v56 = vpop.f32.mrf.mxu0 }
 0x16b   : > { %v1031_v57 = vpop.f32.mrf.mxu1  ;;  %1777 = vtanh.f32 %v1028_v52  ;;  %v1030_v58 = vadd.f32 %v1029_v50, %v917_v53  ;;  %v919_v59 = vadd.f32 %v918_v56, %v2150_v38  ;;  %v1156_v60 = vadd.f32 %v1123_v54, %v1122_v51 }
 0x16c   : > { %v1766_v61 = vpop.eup %1765  ;;  %v922_v62 = vpop.f32.mrf.mxu0  ;;  %v1124_v0 = vmul.f32 %v1764_v55, %v2163_v9 }
 0x16d   : > { %v1035_v63 = vpop.f32.mrf.mxu1  ;;  %1779 = vtanh.f32 %v1030_v58  ;;  %v1032_v1 = vadd.f32 %v1031_v57, %v919_v59  ;;  %v923_v2 = vadd.f32 %v922_v62, %v2148_v37  ;;  %1157 = vadd.xlane.f32.xlu1 %v1156_v60  ;;  %v1125_v3 = vmul.f32 %v1766_v61, %v2166_v12 }
 0x16e   : > { %v1768_v4 = vpop.eup %1767  ;;  %v924_v5 = vpop.f32.mrf.mxu0 }
 0x16f   : > { %v1037_v6 = vpop.f32.mrf.mxu1  ;;  %1781 = vtanh.f32 %v1032_v1  ;;  %v1036_v7 = vadd.f32 %v1035_v63, %v923_v2  ;;  %v925_v8 = vadd.f32 %v924_v5, %v2150_v38  ;;  %v1159_v10 = vadd.f32 %v1125_v3, %v1124_v0 }
 0x170   : > { %v1770_v11 = vpop.eup %1769  ;;  %v926_v13 = vpop.f32.mrf.mxu0  ;;  %v1126_v15 = vmul.f32 %v1768_v4, %v2163_v9 }
 0x171   : > { %v1039_v14 = vpop.f32.mrf.mxu1  ;;  %1783 = vtanh.f32 %v1036_v7  ;;  %v1038_v16 = vadd.f32 %v1037_v6, %v925_v8  ;;  %v927_v17 = vadd.f32 %v926_v13, %v2148_v37  ;;  %1160 = vadd.xlane.f32.xlu1 %v1159_v10  ;;  %v1127_v18 = vmul.f32 %v1770_v11, %v2166_v12 }
 0x172   : > { %v1772_v19 = vpop.eup %1771  ;;  %v928_v20 = vpop.f32.mrf.mxu0 }
 0x173   : > { %v1041_v21 = vpop.f32.mrf.mxu1  ;;  %1785 = vtanh.f32 %v1038_v16  ;;  %v1040_v22 = vadd.f32 %v1039_v14, %v927_v17  ;;  %v929_v23 = vadd.f32 %v928_v20, %v2150_v38  ;;  %v1162_v24 = vadd.f32 %v1127_v18, %v1126_v15 }
 0x174   : > { %v1774_v25 = vpop.eup %1773  ;;  %v932_v26 = vpop.f32.mrf.mxu0  ;;  %v1128_v28 = vmul.f32 %v1772_v19, %v2163_v9 }
 0x175   : > { %v1045_v27 = vpop.f32.mrf.mxu1  ;;  %1787 = vtanh.f32 %v1040_v22  ;;  %v1042_v29 = vadd.f32 %v1041_v21, %v929_v23  ;;  %v933_v30 = vadd.f32 %v932_v26, %v2148_v37  ;;  %1163 = vadd.xlane.f32.xlu0 %v1162_v24  ;;  %v1129_v31 = vmul.f32 %v1774_v25, %v2166_v12 }
 0x176   : > { %v1776_v34 = vpop.eup %1775  ;;  %v934_v35 = vpop.f32.mrf.mxu0 }
 0x177   : > { %v1047_v36 = vpop.f32.mrf.mxu1  ;;  %1789 = vtanh.f32 %v1042_v29  ;;  %v1046_v39 = vadd.f32 %v1045_v27, %v933_v30  ;;  %v935_v40 = vadd.f32 %v934_v35, %v2150_v38  ;;  %v1165_v41 = vadd.f32 %v1129_v31, %v1128_v28 }
 0x178   : > { %v1778_v42 = vpop.eup %1777  ;;  %v936_v43 = vpop.f32.mrf.mxu0  ;;  %v1130_v45 = vmul.f32 %v1776_v34, %v2163_v9 }
 0x179   : > { %v1049_v44 = vpop.f32.mrf.mxu1  ;;  %1791 = vtanh.f32 %v1046_v39  ;;  %v1048_v46 = vadd.f32 %v1047_v36, %v935_v40  ;;  %v937_v47 = vadd.f32 %v936_v43, %v2148_v37  ;;  %1166 = vadd.xlane.f32.xlu1 %v1165_v41  ;;  %v1131_v48 = vmul.f32 %v1778_v42, %v2166_v12 }
 0x17a   : > { %v1780_v49 = vpop.eup %1779  ;;  %v938_v50 = vpop.f32.mrf.mxu0 }
 0x17b   : > { %v1051_v51 = vpop.f32.mrf.mxu1  ;;  %1793 = vtanh.f32 %v1048_v46  ;;  %v1050_v52 = vadd.f32 %v1049_v44, %v937_v47  ;;  %v939_v53 = vadd.f32 %v938_v50, %v2150_v38  ;;  %v1168_v54 = vadd.f32 %v1131_v48, %v1130_v45 }
 0x17c   : > { %v1782_v55 = vpop.eup %1781  ;;  %v942_v56 = vpop.f32.mrf.mxu0  ;;  %v1132_v58 = vmul.f32 %v1780_v49, %v2163_v9 }
 0x17d   : > { %v1055_v57 = vpop.f32.mrf.mxu1  ;;  %1795 = vtanh.f32 %v1050_v52  ;;  %v1052_v59 = vadd.f32 %v1051_v51, %v939_v53  ;;  %v943_v60 = vadd.f32 %v942_v56, %v2148_v37  ;;  %1169 = vadd.xlane.f32.xlu0 %v1168_v54  ;;  %v1133_v61 = vmul.f32 %v1782_v55, %v2166_v12 }
 0x17e   : > { %v1784_v62 = vpop.eup %1783  ;;  %v944_v63 = vpop.f32.mrf.mxu0 }
 0x17f   : > { %v1057_v0 = vpop.f32.mrf.mxu1  ;;  %1797 = vtanh.f32 %v1052_v59  ;;  %v1056_v1 = vadd.f32 %v1055_v57, %v943_v60  ;;  %v945_v2 = vadd.f32 %v944_v63, %v2150_v38  ;;  %v1171_v3 = vadd.f32 %v1133_v61, %v1132_v58 }
 0x180   : > { %v1786_v4 = vpop.eup %1785  ;;  %v946_v5 = vpop.f32.mrf.mxu0  ;;  %v1134_v7 = vmul.f32 %v1784_v62, %v2163_v9 }
 0x181   : > { %v1059_v6 = vpop.f32.mrf.mxu1  ;;  %1799 = vtanh.f32 %v1056_v1  ;;  %v1058_v8 = vadd.f32 %v1057_v0, %v945_v2  ;;  %v947_v10 = vadd.f32 %v946_v5, %v2148_v37  ;;  %1172 = vadd.xlane.f32.xlu1 %v1171_v3  ;;  %v1135_v11 = vmul.f32 %v1786_v4, %v2166_v12 }
 0x182   : > { %v1788_v13 = vpop.eup %1787  ;;  %v948_v14 = vpop.f32.mrf.mxu0 }
 0x183   : > { %v1061_v15 = vpop.f32.mrf.mxu1  ;;  %1801 = vtanh.f32 %v1058_v8  ;;  %v1060_v16 = vadd.f32 %v1059_v6, %v947_v10  ;;  %v949_v17 = vadd.f32 %v948_v14, %v2150_v38  ;;  %v1174_v18 = vadd.f32 %v1135_v11, %v1134_v7 }
 0x184   : > { %v1790_v19 = vpop.eup %1789  ;;  %v952_v20 = vpop.f32.mrf.mxu0  ;;  %v1136_v22 = vmul.f32 %v1788_v13, %v2163_v9  ;;  %v2224_v14 = vand.u32 127, %v358_v32 }
 0x185   : > { %v1065_v21 = vpop.f32.mrf.mxu1  ;;  %1803 = vtanh.f32 %v1060_v16  ;;  %v1062_v23 = vadd.f32 %v1061_v15, %v949_v17  ;;  %v953_v24 = vadd.f32 %v952_v20, %v2148_v37  ;;  %1175 = vadd.xlane.f32.xlu0 %v1174_v18  ;;  %v1137_v25 = vmul.f32 %v1790_v19, %v2166_v12 }
 0x186   : > { %v1792_v26 = vpop.eup %1791  ;;  %v954_v27 = vpop.f32.mrf.mxu0  ;;  %v1238_v17 = vadd.s32 4294967288, %v2224_v14  ;;  %v1245_v18 = vadd.s32 4294967280, %v2224_v14  ;;  %v1266_v19 = vadd.s32 4294967256, %v2224_v14 }
 0x187   : > { %v1067_v28 = vpop.f32.mrf.mxu1  ;;  %1805 = vtanh.f32 %v1062_v23  ;;  %v1066_v29 = vadd.f32 %v1065_v21, %v953_v24  ;;  %v955_v30 = vadd.f32 %v954_v27, %v2150_v38  ;;  %v1177_v31 = vadd.f32 %v1137_v25, %v1136_v22 }
 0x188   : > { %v1794_v34 = vpop.eup %1793  ;;  %v956_v35 = vpop.f32.mrf.mxu0  ;;  %v1138_v39 = vmul.f32 %v1792_v26, %v2163_v9  ;;  %v2231_v21 = vstv %s1198_s7  ;;  %v1236_v22 = vsub.s32 %v2224_v14, %v2141_v33  ;;  %v1241_v23 = vsub.s32 %v1238_v17, %v2141_v33 }
 0x189   : > { %v1069_v36 = vpop.f32.mrf.mxu1  ;;  %1807 = vtanh.f32 %v1066_v29  ;;  %v1068_v40 = vadd.f32 %v1067_v28, %v955_v30  ;;  %v957_v41 = vadd.f32 %v956_v35, %v2148_v37  ;;  %1178 = vadd.xlane.f32.xlu1 %v1177_v31  ;;  %v1139_v42 = vmul.f32 %v1794_v34, %v2166_v12 }
 0x18a   : > { %v1796_v43 = vpop.eup %1795  ;;  %v958_v44 = vpop.f32.mrf.mxu0  ;;  %v1248_v24 = vsub.s32 %v1245_v18, %v2141_v33  ;;  %v1273_v25 = vadd.s32 4294967248, %v2224_v14  ;;  %v1280_v27 = vadd.s32 4294967240, %v2224_v14  ;;  %v1269_v30 = vsub.s32 %v1266_v19, %v2141_v33 }
 0x18b   : > { %1809 = vtanh.f32 %v1068_v40  ;;  %v1070_v45 = vadd.f32 %v1069_v36, %v957_v41  ;;  %v959_v46 = vadd.f32 %v958_v44, %v2150_v38  ;;  %v1180_v47 = vadd.f32 %v1139_v42, %v1138_v39  ;;  %v1071_v49 = vpop.f32.mrf.mxu1 }
 0x18c   : > { %v1798_v48 = vpop.eup %1797  ;;  %v1140_v51 = vmul.f32 %v1796_v43, %v2163_v9  ;;  %v1287_v35 = vadd.s32 4294967232, %v2224_v14  ;;  %v1294_v36 = vadd.s32 4294967224, %v2224_v14  ;;  %v1276_v42 = vsub.s32 %v1273_v25, %v2141_v33 }
 0x18d   : > { %1811 = vtanh.f32 %v1070_v45  ;;  %v1072_v50 = vadd.f32 %v1071_v49, %v959_v46  ;;  %1181 = vadd.xlane.f32.xlu0 %v1180_v47  ;;  %v1141_v52 = vmul.f32 %v1798_v48, %v2166_v12  ;;  %v1283_v44 = vsub.s32 %v1280_v27, %v2141_v33 }
 0x18e   : > { %v1800_v37 = vpop.eup %1799  ;;  %v1301_v45 = vadd.s32 4294967216, %v2224_v14  ;;  %v1308_v49 = vadd.s32 4294967208, %v2224_v14  ;;  %v1336_v19 = vadd.s32 4294967176, %v2224_v14 }
 0x18f   : > { %1813 = vtanh.f32 %v1072_v50  ;;  %v1183_v53 = vadd.f32 %v1141_v52, %v1140_v51  ;;  %v1142_v55 = vmul.f32 %v1800_v37, %v2163_v9  ;;  %v1290_v52 = vsub.s32 %v1287_v35, %v2141_v33 }
 0x190   : > { %v1802_v54 = vpop.eup %1801  ;;  %v1297_v37 = vsub.s32 %v1294_v36, %v2141_v33 }
 0x191   : > { %1184 = vadd.xlane.f32.xlu1 %v1183_v53  ;;  %v1143_v56 = vmul.f32 %v1802_v54, %v2166_v12 }
 0x192   : > { %v1804_v38 = vpop.eup %1803 }
 0x193   : > { %v1186_v57 = vadd.f32 %v1143_v56, %v1142_v55  ;;  %v1144_v59 = vmul.f32 %v1804_v38, %v2163_v9  ;;  %v1315_v38 = vadd.s32 4294967200, %v2224_v14 }
 0x194   : > { %v1806_v58 = vpop.eup %1805 }
 0x195   : > { %1187 = vadd.xlane.f32.xlu0 %v1186_v57  ;;  %v1145_v60 = vmul.f32 %v1806_v58, %v2166_v12 }
 0x196   : > { %v1808_v61 = vpop.eup %1807 }
 0x197   : > { %v1189_v62 = vadd.f32 %v1145_v60, %v1144_v59  ;;  %v1146_v0 = vmul.f32 %v1808_v61, %v2163_v9  ;;  %v1304_v59 = vsub.s32 %v1301_v45, %v2141_v33  ;;  %v1322_v60 = vadd.s32 4294967192, %v2224_v14 }
 0x198   : > { %v1810_v63 = vpop.eup %1809 }
 0x199   : > { %1190 = vadd.xlane.f32.xlu1 %v1189_v62  ;;  %v1147_v1 = vmul.f32 %v1810_v63, %v2166_v12  ;;  %v1325_v17 = vsub.s32 %v1322_v60, %v2141_v33 }
 0x19a   : > { %v1812_v2 = vpop.eup %1811 }
 0x19b   : > { %v1192_v3 = vadd.f32 %v1147_v1, %v1146_v0  ;;  %v1148_v5 = vmul.f32 %v1812_v2, %v2163_v9  ;;  %v1252_v9 = vadd.s32 4294967272, %v2224_v14  ;;  %v1311_v0 = vsub.s32 %v1308_v49, %v2141_v33 }
 0x19c   : > { %v1814_v4 = vpop.eup %1813 }
 0x19d   : > { %1193 = vadd.xlane.f32.xlu0 %v1192_v3  ;;  %v1149_v6 = vmul.f32 %v1814_v4, %v2166_v12  ;;  %v1259_v12 = vadd.s32 4294967264, %v2224_v14  ;;  %v1255_v26 = vsub.s32 %v1252_v9, %v2141_v33 }
 0x19f   : > { %v1195_v7 = vadd.f32 %v1149_v6, %v1148_v5  ;;  %v1262_v29 = vsub.s32 %v1259_v12, %v2141_v33  ;;  %v1329_v6 = vadd.s32 4294967184, %v2224_v14 }
 0x1a1   : > { %1196 = vadd.xlane.f32.xlu1 %v1195_v7 }
 0x1ee   : > { %v1152_v8 = vpop.xlane.xlu0 %1151 }
 0x1ef   : > { %v1200_v40 = vadd.f32 %v2231_v21, %v1152_v8 }
 0x1f1   : > { %v1237_v54 = vrot.slane %v1200_v40, %v1236_v22 }
 0x1f2   : > { %v1155_v11 = vpop.xlane.xlu0 %1154 }
 0x1f3   : > { %v1201_v28 = vadd.f32 %v2231_v21, %v1155_v11  ;;  %v1318_v11 = vsub.s32 %v1315_v38, %v2141_v33 }
 0x1f5   : > { %v1242_v46 = vrot.slane %v1201_v28, %v1241_v23 }
 0x1f6   : > { %v1158_v10 = vpop.xlane.xlu1 %1157 }
 0x1f7   : > { %v1202_v34 = vadd.f32 %v2231_v21, %v1158_v10  ;;  %v1244_v61 = vsel %vm1243_vm0, %v1242_v46, %v1237_v54 }
 0x1f9   : > { %v1249_v50 = vrot.slane %v1202_v34, %v1248_v24 }
 0x1fa   : > { %v1161_v13 = vpop.xlane.xlu1 %1160 }
 0x1fb   : > { %v1203_v41 = vadd.f32 %v2231_v21, %v1161_v13  ;;  %v1251_v2 = vsel %vm1250_vm1, %v1249_v50, %v1244_v61 }
 0x1fd   : > { %v1256_v55 = vrot.slane %v1203_v41, %v1255_v26 }
 0x1fe   : > { %v1164_v15 = vpop.xlane.xlu0 %1163 }
 0x1ff   : > { %v1204_v43 = vadd.f32 %v2231_v21, %v1164_v15  ;;  %v1258_v7 = vsel %vm1257_vm2, %v1256_v55, %v1251_v2 }
 0x201   : > { %v1263_v57 = vrot.slane %v1204_v43, %v1262_v29 }
 0x202   : > { %v1167_v16 = vpop.xlane.xlu1 %1166 }
 0x203   : > { %v1205_v47 = vadd.f32 %v2231_v21, %v1167_v16  ;;  %v1265_v13 = vsel %vm1264_vm3, %v1263_v57, %v1258_v7 }
 0x205   : > { %v1270_v62 = vrot.slane %v1205_v47, %v1269_v30  ;;  %v1339_v30 = vsub.s32 %v1336_v19, %v2141_v33 }
 0x206   : > { %v1170_v20 = vpop.xlane.xlu0 %1169 }
 0x207   : > { %v1206_v51 = vadd.f32 %v2231_v21, %v1170_v20  ;;  %v1272_v18 = vsel %vm1271_vm4, %v1270_v62, %v1265_v13 }
 0x209   : > { %v1277_v3 = vrot.slane %v1206_v51, %v1276_v42 }
 0x20a   : > { %v1173_v32 = vpop.xlane.xlu1 %1172 }
 0x20b   : > { %v1207_v56 = vadd.f32 %v2231_v21, %v1173_v32  ;;  %v1279_v20 = vsel %vm1278_vm5, %v1277_v3, %v1272_v18  ;;  %v1332_v32 = vsub.s32 %v1329_v6, %v2141_v33 }
 0x20d   : > { %v1284_v8 = vrot.slane %v1207_v56, %v1283_v44 }
 0x20e   : > { %v1176_v31 = vpop.xlane.xlu0 %1175 }
 0x20f   : > { %v1208_v58 = vadd.f32 %v2231_v21, %v1176_v31  ;;  %v1286_v24 = vsel %vm1285_vm6, %v1284_v8, %v1279_v20 }
 0x211   : > { %v1291_v15 = vrot.slane %v1208_v58, %v1290_v52 }
 0x212   : > { %v1179_v39 = vpop.xlane.xlu1 %1178 }
 0x213   : > { %v1209_v63 = vadd.f32 %v2231_v21, %v1179_v39  ;;  %v1293_v27 = vsel %vm1292_vm7, %v1291_v15, %v1286_v24 }
 0x215   : > { %v1298_v9 = vrot.slane %v1209_v63, %v1297_v37 }
 0x216   : > { %v1182_v48 = vpop.xlane.xlu0 %1181 }
 0x217   : > { %v1210_v4 = vadd.f32 %v2231_v21, %v1182_v48  ;;  %v1300_v14 = vsel %vm1299_vm8, %v1298_v9, %v1293_v27 }
 0x219   : > { %v1305_v22 = vrot.slane %v1210_v4, %v1304_v59 }
 0x21a   : > { %v1185_v53 = vpop.xlane.xlu1 %1184 }
 0x21b   : > { %v1211_v10 = vadd.f32 %v2231_v21, %v1185_v53  ;;  %v1307_v31 = vsel %vm1306_vm9, %v1305_v22, %v1300_v14 }
 0x21d   : > { %v1312_v25 = vrot.slane %v1211_v10, %v1311_v0 }
 0x21e   : > { %v1188_v1 = vpop.xlane.xlu0 %1187 }
 0x21f   : > { %v1212_v16 = vadd.f32 %v2231_v21, %v1188_v1  ;;  %v1314_v36 = vsel %vm1313_vm10, %v1312_v25, %v1307_v31 }
 0x221   : > { %v1319_v28 = vrot.slane %v1212_v16, %v1318_v11 }
 0x222   : > { %v1191_v5 = vpop.xlane.xlu1 %1190 }
 0x223   : > { %v1213_v12 = vadd.f32 %v2231_v21, %v1191_v5  ;;  %v1321_v40 = vsel %vm1320_vm11, %v1319_v28, %v1314_v36 }
 0x225   : > { %v1326_v29 = vrot.slane %v1213_v12, %v1325_v17 }
 0x226   : > { %v1194_v23 = vpop.xlane.xlu0 %1193 }
 0x227   : > { %v1214_v26 = vadd.f32 %v2231_v21, %v1194_v23  ;;  %v1328_v41 = vsel %vm1327_vm12, %v1326_v29, %v1321_v40 }
 0x229   : > { %v1333_v34 = vrot.slane %v1214_v26, %v1332_v32 }
 0x22a   : > { %v1197_v35 = vpop.xlane.xlu1 %1196 }
 0x22b   : > { %v1215_v39 = vadd.f32 %v2231_v21, %v1197_v35  ;;  %v1335_v43 = vsel %vm1334_vm13, %v1333_v34, %v1328_v41 }
 0x22d   : > { %v1340_v42 = vrot.slane %v1215_v39, %v1339_v30 }
 0x22f   : > { %v1342_v33 = vsel %vm1341_vm14, %v1340_v42, %v1335_v43 }
 0x230   : > { %1344 = vst [vmem:[%s258_s17] sm:$0x1] %v1342_v33 }
 0x231   : > { %1882 = shalt.err (!%p1879_p0)
}
 0x232   : > { %s1883_s13 = scalar_lea.hbm %s2289_s24, 16  ;;  %s1887_s27 = scalar_lea.hbm %s2330_s5, 48 }
 0x233   : > { %p1884_p5 = scmp.ne.s32.totalorder %s2289_s24, %s1883_s13  ;;  %p1888_p4 = scmp.lt.s32.totalorder %s2289_s24, %s2330_s5 }
 0x234   : > { %p1889_p6 = scmp.lt.s32.totalorder %s1887_s27, %s1883_s13 }
 0x235   : > { %p1885_p9 = pnand %p1884_p5, %p2346_p10 }
 0x236   : > { %p1890_p8 = por %p1889_p6, %p1888_p4 }
 0x237   : > { %p1886_p1 = pneg %p1885_p9 }
 0x239   : > { %p1891_p3 = pnand %p1890_p8, %p1886_p1 }
 0x23b   : > { %1894 = shalt.err (!%p1891_p3)
}
 0x23c   : > { %1552 = dma.vmem_to_hbm [thread:$0]  (%p2346_p10), %s1359_s16, 16, %s2289_s24, %s1346_s29  }
 0x23d PF: > { %p1569_p7 = scmp.ge.s32.totalorder %s1937_s23, 2  ;;  %s1370_s7 = sand.u32 1, %s1925_s20  }
 0x23e   : > { %p2347_p11 = scmp.ne.s32.totalorder %s2336_s26, 0  ;;  %s1371_s8 = scalar_lea.sflag [#allocation5], %s1370_s7 }
 0x240   : > { %p1563_p12 = pnand %p1569_p7, %p2347_p11 }
 0x242   : > { %p1564_p2 = pneg %p1563_p12 }
 0x244   : > { %1920 = dma.done.wait (%p1564_p2), %s1371_s8, 16  }
 0x245   : > { %1922 = vsyncadd (%p1564_p2), %s1371_s8, 4294967280  ;;  %p20_p13 = scmp.ge.s32.totalorder %s2032_s6, 5   ;;  %s2348_s20 = smov %s1929_s21 }
 0x246   : > { %s2349_s21 = smov %s1933_s22  ;;  %s2350_s22 = smov %s2049_s14 }
 0x247   : > { %s2351_s23 = smov %s2032_s6  ;;  %22 = sbr.rel (!%p20_p13) target bundleno = 8 (0x8), region = 89 }
 0x24c   :  { %1375 = vsyncpa [#allocation4], 1 }
 0x24d   :  { %1377 = vsyncpa [#allocation4 + $0x1], 1 }
 0x24e   :  { %1378 = vsyncpa [#allocation7], 1 }
 0x24f   :  { %1379 = vsyncpa [#allocation5], 1 }
 0x250   :  { %1381 = vsyncpa [#allocation5 + $0x1], 1 }

</bundles_post_ra>
